<compile_context>
chip_gen: v6e
topology: v6e:2x2x1
jax: 0.10.0
libtpu: 0.0.40
codegen_flags: <defaults>
</compile_context>

<pallas_src>
import math

import jax
import jax.numpy as jnp
from jax.experimental import pallas as pl
from jax.experimental.pallas import tpu as pltpu

_DEFAULT_COLS = 1024        # lane-dense fallback width (multiple of 128)
_MAX_TILE_ELEMS = 1 << 20   # 1 Mi elems/tile: uint8-in + f32-out, double-buffered = 10 MiB
_ROW_GRANULE = 32           # uint8 sublane packing granule (8 sublanes x 4-way packing)


def _normalize_kernel(x_ref, o_ref):
    # x_ref: (tile_r, cols) uint8 tile in VMEM ; o_ref: (tile_r, cols) out_dtype tile.
    x = x_ref[...].astype(jnp.float32)            # .float()
    o_ref[...] = (x / 255.0 - 0.5).astype(o_ref.dtype)   # / 255 - 0.5


def _run_normalize(x2, rows, cols, out_dtype, total_elems):
    # Pick the largest row tile that keeps the double-buffered pipeline well inside
    # the scoped-VMEM default on every TPU generation (v5e/v6e/v7x).
    max_tile_r = max(_ROW_GRANULE,
                     (_MAX_TILE_ELEMS // cols) // _ROW_GRANULE * _ROW_GRANULE)
    if rows <= max_tile_r:
        tile_r = rows            # single block == full array dims (always legal)
    else:
        tile_r = max_tile_r      # multiple of 32; ragged last block is masked by Pallas
    grid = (pl.cdiv(rows, tile_r),)

    out_bytes = jnp.dtype(out_dtype).itemsize
    return pl.pallas_call(
        _normalize_kernel,
        out_shape=jax.ShapeDtypeStruct((rows, cols), out_dtype),
        grid=grid,
        in_specs=[pl.BlockSpec((tile_r, cols), lambda i: (i, 0))],
        out_specs=pl.BlockSpec((tile_r, cols), lambda i: (i, 0)),
        compiler_params=pltpu.CompilerParams(
            # TODO(synk): on v7x verify this axis is sharded across both TensorCores;
            # if plain "parallel" loops on one TC, switch to pltpu.CORE_PARALLEL.
            dimension_semantics=("parallel",)),
        cost_estimate=pl.CostEstimate(
            flops=2 * total_elems,
            transcendentals=0,
            bytes_accessed=total_elems * (1 + out_bytes)),
    )(x2)


def base_model_forward(x, out_dtype=jnp.float32):
    """Pallas equivalent of BaseModel.forward: x.float() / 255 - 0.5 (any shape).

    out_dtype defaults to float32 for parity with torch's .float(); pass
    jnp.bfloat16 when the downstream `_forward` accepts it to cut output HBM
    traffic roughly in half (the kernel is purely bandwidth-bound).
    """
    orig_shape = x.shape
    total = math.prod(orig_shape) if orig_shape else 1
    last = orig_shape[-1] if orig_shape else 1

    # Path A: last dim already lane-dense (multiple of 128) and tileable:
    # collapse leading dims only -> no minor-dim relayout copy, no pad, no slice.
    if x.ndim >= 2 and last % 128 == 0 and last <= _MAX_TILE_ELEMS // _ROW_GRANULE:
        rows, cols = total // last, last
        out2 = _run_normalize(x.reshape(rows, cols), rows, cols, out_dtype, total)
        return out2.reshape(orig_shape)

    # Path B: flattened size is a multiple of 1024 -> reshape only, no pad / slice.
    if total % _DEFAULT_COLS == 0:
        rows, cols = total // _DEFAULT_COLS, _DEFAULT_COLS
        out2 = _run_normalize(x.reshape(rows, cols), rows, cols, out_dtype, total)
        return out2.reshape(orig_shape)

    # Path C: truly ragged size -> pad the flat view to the next 1024 multiple and
    # slice the result back (only path that pays extra wrapper-side HBM traffic).
    rows, cols = pl.cdiv(total, _DEFAULT_COLS), _DEFAULT_COLS
    flat = jnp.pad(x.reshape(-1), (0, rows * cols - total))
    out2 = _run_normalize(flat.reshape(rows, cols), rows, cols, out_dtype, total)
    return out2.reshape(-1)[:total].reshape(orig_shape)


if __name__ == "__main__":
    key = jax.random.PRNGKey(0)
    k1, k2, k3 = jax.random.split(key, 3)

    # NCHW uint8 "image" batch: batch=2, channels=4, spatial=16x16
    # (total = 2048 -> path B: reshape only, no pad/slice).
    x = jax.random.randint(k1, (2, 4, 16, 16), 0, 256, dtype=jnp.int32).astype(jnp.uint8)
    y = jax.block_until_ready(base_model_forward(x))
    ref = x.astype(jnp.float32) / 255.0 - 0.5
    assert y.shape == x.shape and y.dtype == jnp.float32
    assert jnp.max(jnp.abs(y - ref)) < 1e-6

    # Ragged total (not a multiple of 1024) -> padded path C.
    x2 = jax.random.randint(k2, (2, 3, 15, 17), 0, 256, dtype=jnp.int32).astype(jnp.uint8)
    y2 = jax.block_until_ready(base_model_forward(x2))
    ref2 = x2.astype(jnp.float32) / 255.0 - 0.5
    assert y2.shape == x2.shape and y2.dtype == jnp.float32
    assert jnp.max(jnp.abs(y2 - ref2)) < 1e-6

    # Lane-dense last dim (multiple of 128) -> no-relayout path A.
    x3 = jax.random.randint(k3, (2, 3, 8, 256), 0, 256, dtype=jnp.int32).astype(jnp.uint8)
    y3 = jax.block_until_ready(base_model_forward(x3))
    ref3 = x3.astype(jnp.float32) / 255.0 - 0.5
    assert y3.shape == x3.shape and y3.dtype == jnp.float32
    assert jnp.max(jnp.abs(y3 - ref3)) < 1e-6

    print("KERNEL_OK")
</pallas_src>

<mosaic_0001>
module attributes {stable_mosaic.version = 11 : i64} {
  func.func @_normalize_kernel(%arg0: i32, %arg1: memref<2x1024xi8, #tpu.memory_space<vmem>>, %arg2: memref<2x1024xf32, #tpu.memory_space<vmem>>) attributes {dimension_semantics = [#tpu.dimension_semantics<parallel>], iteration_bounds = array<i64: 1>, scalar_prefetch = 0 : i64, scratch_operands = 0 : i64, tpu.core_type = #tpu.core_type<tc>, window_params = [{transform_indices = @transform_0, window_bounds = array<i64: 2, 1024>}, {transform_indices = @transform_1, window_bounds = array<i64: 2, 1024>}]} {
    %c0 = arith.constant 0 : index
    %c0_0 = arith.constant 0 : index
    %0 = vector.load %arg1[%c0, %c0_0] : memref<2x1024xi8, #tpu.memory_space<vmem>>, vector<2x1024xi8>
    %1 = arith.uitofp %0 : vector<2x1024xi8> to vector<2x1024xf32>
    %cst = arith.constant 2.550000e+02 : f32
    %2 = vector.broadcast %cst : f32 to vector<2x1024xf32>
    %3 = arith.divf %1, %2 : vector<2x1024xf32>
    %cst_1 = arith.constant 5.000000e-01 : f32
    %4 = vector.broadcast %cst_1 : f32 to vector<2x1024xf32>
    %5 = arith.subf %3, %4 : vector<2x1024xf32>
    %c0_2 = arith.constant 0 : index
    %c0_3 = arith.constant 0 : index
    %6 = vector.load %arg2[%c0_2, %c0_3] : memref<2x1024xf32, #tpu.memory_space<vmem>>, vector<2x1024xf32>
    tpu.vector_store %arg2[%c0_2, %c0_3], %5 {strides = array<i32>} : memref<2x1024xf32, #tpu.memory_space<vmem>>, vector<2x1024xf32>,
    return
  }
  func.func @transform_0(%arg0: i32) -> (i32, i32) {
    %c0_i32 = arith.constant 0 : i32
    %c0_i32_0 = arith.constant 0 : i32
    return %arg0, %c0_i32 : i32, i32
  }
  func.func @transform_1(%arg0: i32) -> (i32, i32) {
    %c0_i32 = arith.constant 0 : i32
    %c0_i32_0 = arith.constant 0 : i32
    return %arg0, %c0_i32 : i32, i32
  }
}

</mosaic_0001>

<bundles_post_ra>
// kernel: tpu_custom_call.1
= control target key start
LH: loop header
LB: loop body
LE: loop exit
PB: predicated region body
PF: predicated region fallthrough
CT: control target
= control target key end

     0   :  { %6 = vsyncpa [#allocation3], 0  ;;  %s166_s0 = inlined_call_operand.hbm [shape: u8[2,1024], index: 0, kind: input, shape index: {}]   ;;  %s167_s1 = inlined_call_operand.hbm [shape: f32[2,1024], index: 1, kind: output, shape index: {}]  }
   0x1   :  { %7 = vsyncpa [#allocation4], 0  ;;  %s147_s6 = smov [#allocation2]  }
   0x2   :  { %s14_s7 = sshll.u32 %s147_s6, 4  ;;  %s15_s7 = int_to_ptr.vmem [resolvable:$true] %s14_s7 }
   0x3   :  { %s111_s8 = scalar_lea.vmem %s15_s7, 128  ;;  %p116_p1 = scmp.lt.s32.totalorder %s15_s7, %s15_s7 }
   0x4   :  { %p112_p0 = scmp.ne.s32.totalorder %s15_s7, %s111_s8  ;;  %p117_p2 = scmp.lt.s32.totalorder %s111_s8, %s111_s8 }
   0x6   :  { %p118_p3 = por %p117_p2, %p116_p1 }
   0x8   :  { %p119_p4 = pnand %p118_p3, %p112_p0 }
   0xa   :  { %122 = shalt.err (!%p119_p4)
}
   0xb   :  { %17 = dma.hbm_to_vmem [thread:$0]  %s166_s0, 128, %s15_s7, [#allocation3]  }
   0xc   :  { %143 = dma.done.wait [#allocation3], 128  }
   0xd   :  { %144 = vsyncadd [#allocation3], 4294967168  ;;  %v148_v0 = vmov 1983009808   ;;  %v50_v2 = vlaneseq  ;;  %v21_v3 = vld [vmem:[#allocation2] sm:$0xff]  ;;  %s149_s0 = smov [#allocation5]  }
   0xe   :  { %v48_v1 = vunpack.c.l.s4 %v148_v0  ;;  %v22_v4 = vunpack.c.0.s8 %v21_v3  ;;  %v23_v5 = vunpack.c.1.s8 %v21_v3  ;;  %v24_v6 = vunpack.c.2.s8 %v21_v3  ;;  %s87_s11 = sshll.u32 %s149_s0, 4  ;;  %s88_s11 = int_to_ptr.vmem [resolvable:$true] %s87_s11 }
   0xf   :  { %v25_v7 = vunpack.c.3.s8 %v21_v3  ;;  %v51_v9 = vshrl.u32 %v50_v2, 7  ;;  %s123_s12 = scalar_lea.vmem %s88_s11, 256  ;;  %p128_p6 = scmp.lt.s32.totalorder %s88_s11, %s88_s11 }
  0x10   :  { %v49_v8 = vunpack.c.0.s8 %v48_v1  ;;  %v26_v10 = vand.u32 255, %v22_v4  ;;  %v27_v11 = vand.u32 255, %v23_v5  ;;  %v28_v12 = vand.u32 255, %v24_v6  ;;  %p124_p5 = scmp.ne.s32.totalorder %s88_s11, %s123_s12  ;;  %p129_p7 = scmp.lt.s32.totalorder %s123_s12, %s123_s12 }
  0x11   :  { %v29_v13 = vand.u32 255, %v25_v7 }
  0x12   :  { %v30_v14 = vcvt.s32.f32 %v26_v10  ;;  %v31_v15 = vcvt.s32.f32 %v27_v11  ;;  %v32_v16 = vcvt.s32.f32 %v28_v12  ;;  %v52_v20 = vsub.s32 %v49_v8, %v51_v9  ;;  %p130_p8 = por %p129_p7, %p128_p6 }
  0x13   :  { %v33_v17 = vcvt.s32.f32 %v29_v13 }
  0x14   :  { %v35_v18 = vmul.f32 0.003921569, %v30_v14  ;;  %v36_v19 = vmul.f32 0.003921569, %v31_v15  ;;  %v37_v21 = vmul.f32 0.003921569, %v32_v16  ;;  %p131_p9 = pnand %p130_p8, %p124_p5 }
  0x15   :  { %v38_v22 = vmul.f32 0.003921569, %v33_v17 }
  0x16   :  { %v96_v23 = vadd.f32 -0.5, %v35_v18  ;;  %v97_v24 = vadd.f32 -0.5, %v36_v19  ;;  %v98_v25 = vadd.f32 -0.5, %v37_v21 }
  0x17   :  { %v99_v26 = vadd.f32 -0.5, %v38_v22 }
  0x18   :  { %v53_v27 = vrot.slane %v96_v23, %v52_v20  ;;  %v60_v28 = vrot.slane %v97_v24, %v52_v20  ;;  %v68_v29 = vrot.slane %v98_v25, %v52_v20 }
  0x19   :  { %v75_v30 = vrot.slane %v99_v26, %v52_v20 }
  0x1a   :  { %v61_v31 = vcombine.low %v53_v27, %v60_v28 }
  0x1b   :  { %v76_v32 = vcombine.low %v68_v29, %v75_v30 }
  0x1c   :  { %79 = vst [vmem:[#allocation5] sm:$0xff] %v61_v31 }
  0x1d   :  { %80 = vst [vmem:[#allocation5 + $0x8] sm:$0xff] %v76_v32 }
  0x1e   :  { %134 = shalt.err (!%p131_p9)
}
  0x1f   :  { %90 = dma.vmem_to_hbm [thread:$0]  %s88_s11, 256, %s167_s1, [#allocation4]  }
  0x20   :  { %145 = dma.done.wait [#allocation4], 256  }
  0x21   :  { %146 = vsyncadd [#allocation4], 4294967040 }
  0x22   :  { %94 = vsyncpa [#allocation3], 1 }
  0x23   :  { %95 = vsyncpa [#allocation4], 1 }

</bundles_post_ra>
